<compile_context>
chip_gen: v7x
topology: tpu7x:2x2x1
jax: 0.10.0
libtpu: 0.0.40
codegen_flags: <defaults>
</compile_context>

<pallas_src>
import functools

import jax
import jax.numpy as jnp
from jax.experimental import pallas as pl
from jax.experimental.pallas import tpu as pltpu

EPS = 1e-5  # nn.BatchNorm1d default eps


def _res2_kernel(x_ref, w_ref, g_ref, b_ref, o_ref, sp_ref, *, mxu_dtype):
    """One grid step == one transformed channel group i.

    x_ref : (N, width, T)  input group i          (scale dim squeezed)
    w_ref : (width, width) pointwise conv weight  for group i
    g_ref : (width, 1)     BN gamma               for group i
    b_ref : (width, 1)     BN beta                for group i
    o_ref : (N, width, T)  output group i (HBM buffer aliased with the input)
    sp_ref: (N, width, T)  f32 VMEM carry of the previous group's BN output
    """
    i = pl.program_id(0)
    n, width, t = x_ref.shape

    @pl.when(i == 0)
    def _():
        sp_ref[...] = jnp.zeros_like(sp_ref)

    # Residual carry: sp = spx[0] at i==0, else sp_prev + spx[i].
    s = sp_ref[...] + x_ref[...].astype(jnp.float32)

    # Conv1d(kernel_size=1, bias=False) == channel matmul on the MXU, batched
    # over N (channels on sublanes, T on lanes -> no in-kernel transposes).
    w_b = jnp.broadcast_to(w_ref[...].astype(mxu_dtype), (n, width, width))
    y = jax.lax.dot_general(
        w_b, s.astype(mxu_dtype),
        dimension_numbers=(((2,), (1,)), ((0,), (0,))),
        preferred_element_type=jnp.float32)          # (N, width, T) f32
    y = jnp.maximum(y, 0.0)                          # ReLU

    # BatchNorm1d (training mode, biased variance) over (N, T), folded into a
    # per-channel affine out = a*y + c; single pass (sum and sum of squares).
    inv_cnt = 1.0 / float(n * t)
    mean = jnp.sum(jnp.sum(y, axis=2, keepdims=True), axis=0, keepdims=True) * inv_cnt
    ex2 = jnp.sum(jnp.sum(y * y, axis=2, keepdims=True), axis=0, keepdims=True) * inv_cnt
    var = jnp.maximum(ex2 - mean * mean, 0.0)
    a = g_ref[...] * jax.lax.rsqrt(var + EPS)        # (1, width, 1)
    c = b_ref[...] - a * mean                        # (1, width, 1)
    sp_new = a * y + c                               # (N, width, T)

    o_ref[...] = sp_new.astype(o_ref.dtype)

    @pl.when(i + 1 < pl.num_programs(0))
    def _():
        sp_ref[...] = sp_new                         # carry to the next group


def res2conv1d_relu_bn(x, conv_w, bn_gamma, bn_beta, *, scale,
                       mxu_dtype=jnp.bfloat16):
    """x: (N, C, T) (PyTorch NCT layout). Returns (N, C, T)."""
    N, C, T = x.shape
    assert C % scale == 0
    width = C // scale
    nums = scale if scale == 1 else scale - 1
    assert conv_w.shape == (nums, width, width)

    # Free reshape (C = scale*width is contiguous): no HBM transpose.
    x_g = x.reshape(N, scale, width, T)
    w = conv_w.astype(jnp.float32)
    g = bn_gamma.reshape(nums, width, 1).astype(jnp.float32)
    b = bn_beta.reshape(nums, width, 1).astype(jnp.float32)

    # VMEM budget: 2x double-buffered in + 2x double-buffered out + carry.
    blk_bytes = N * width * T * 4
    vmem_est = 5 * blk_bytes + 4 * nums * width * (width + 2) + (2 << 20)
    vmem_limit = int(min(max(vmem_est, 32 << 20), 64 << 20))

    kernel = functools.partial(_res2_kernel, mxu_dtype=mxu_dtype)
    out_g = pl.pallas_call(
        kernel,
        grid=(nums,),
        in_specs=[
            pl.BlockSpec((N, None, width, T), lambda i: (0, i, 0, 0)),   # x group i
            pl.BlockSpec((None, width, width), lambda i: (i, 0, 0)),     # conv w_i
            pl.BlockSpec((None, width, 1), lambda i: (i, 0, 0)),         # gamma_i
            pl.BlockSpec((None, width, 1), lambda i: (i, 0, 0)),         # beta_i
        ],
        out_specs=pl.BlockSpec((N, None, width, T), lambda i: (0, i, 0, 0)),
        out_shape=jax.ShapeDtypeStruct((N, scale, width, T), x.dtype),
        scratch_shapes=[pltpu.VMEM((N, width, T), jnp.float32)],
        input_output_aliases={0: 0},   # pass-through group stays in place
        compiler_params=pltpu.CompilerParams(
            dimension_semantics=("arbitrary",),
            vmem_limit_bytes=vmem_limit,
        ),
    )(x_g, w, g, b)

    return out_g.reshape(N, C, T)


def _reference_forward(x, conv_w, bn_gamma, bn_beta, *, scale,
                       mxu_dtype=jnp.float32):
    """Pure-JAX reference mirroring the PyTorch forward (training-mode BN)."""
    N, C, T = x.shape
    width = C // scale
    nums = scale if scale == 1 else scale - 1
    spx = [x[:, i * width:(i + 1) * width, :] for i in range(scale)]
    out = []
    sp = None
    for i in range(nums):
        sp = spx[i] if i == 0 else sp + spx[i]
        y = jnp.einsum("oc,nct->not",
                       conv_w[i].astype(mxu_dtype), sp.astype(mxu_dtype),
                       preferred_element_type=jnp.float32,
                       precision=jax.lax.Precision.HIGHEST)  # Conv1d k=1, no bias
        y = jnp.maximum(y, 0.0)                               # ReLU
        mean = jnp.mean(y, axis=(0, 2), keepdims=True)        # BN batch stats
        var = jnp.mean(jnp.square(y - mean), axis=(0, 2), keepdims=True)
        sp = (bn_gamma[i][None, :, None] * (y - mean) * jax.lax.rsqrt(var + EPS)
              + bn_beta[i][None, :, None])
        out.append(sp)
    if scale != 1:
        out.append(spx[nums])
    return jnp.concatenate(out, axis=1)


if __name__ == "__main__":
    # Small shapes consistent with the module: batch=2, channels=16, time=16, scale=4.
    N, C, T, SCALE = 2, 16, 16, 4
    width = C // SCALE
    nums = SCALE - 1

    key = jax.random.PRNGKey(0)
    k_x, k_w, k_g, k_b = jax.random.split(key, 4)
    x = jax.random.normal(k_x, (N, C, T), jnp.float32)
    conv_w = 0.5 * jax.random.normal(k_w, (nums, width, width), jnp.float32)
    bn_gamma = 1.0 + 0.1 * jax.random.normal(k_g, (nums, width), jnp.float32)
    bn_beta = 0.1 * jax.random.normal(k_b, (nums, width), jnp.float32)

    fwd_bf16 = jax.jit(functools.partial(res2conv1d_relu_bn, scale=SCALE))
    fwd_f32 = jax.jit(functools.partial(res2conv1d_relu_bn, scale=SCALE,
                                        mxu_dtype=jnp.float32))

    out_bf16 = jax.block_until_ready(fwd_bf16(x, conv_w, bn_gamma, bn_beta))
    out_f32 = jax.block_until_ready(fwd_f32(x, conv_w, bn_gamma, bn_beta))
    assert out_bf16.shape == (N, C, T) and out_f32.shape == (N, C, T)

    # f32 MXU path must match the PyTorch-faithful f32 reference tightly.
    ref_f32 = _reference_forward(x, conv_w, bn_gamma, bn_beta, scale=SCALE)
    assert jnp.allclose(out_f32, ref_f32, atol=1e-4, rtol=1e-4), "f32 path mismatch"

    # Default bf16-MXU path matches a reference using the same operand cast.
    ref_bf16 = _reference_forward(x, conv_w, bn_gamma, bn_beta, scale=SCALE,
                                  mxu_dtype=jnp.bfloat16)
    assert jnp.allclose(out_bf16, ref_bf16, atol=2e-2, rtol=2e-2), "bf16 path mismatch"

    print("KERNEL_OK")
</pallas_src>

<mosaic_0001>
module attributes {stable_mosaic.version = 11 : i64} {
  func.func @_res2_kernel(%arg0: i32, %arg1: memref<2x1x4x16xf32, #tpu.memory_space<vmem>>, %arg2: memref<1x4x4xf32, #tpu.memory_space<vmem>>, %arg3: memref<1x4x1xf32, #tpu.memory_space<vmem>>, %arg4: memref<1x4x1xf32, #tpu.memory_space<vmem>>, %arg5: memref<2x1x4x16xf32, #tpu.memory_space<vmem>>, %arg6: memref<2x4x16xf32, #tpu.memory_space<vmem>>) attributes {dimension_semantics = [#tpu.dimension_semantics<arbitrary>], iteration_bounds = array<i64: 3>, scalar_prefetch = 0 : i64, scratch_operands = 1 : i64, tpu.core_type = #tpu.core_type<tc>, window_params = [{transform_indices = @transform_0, window_bounds = array<i64: 2, 1, 4, 16>}, {transform_indices = @transform_1, window_bounds = array<i64: 1, 4, 4>}, {transform_indices = @transform_2, window_bounds = array<i64: 1, 4, 1>}, {transform_indices = @transform_3, window_bounds = array<i64: 1, 4, 1>}, {transform_indices = @transform_4, window_bounds = array<i64: 2, 1, 4, 16>}]} {
    %c0_i32 = arith.constant 0 : i32
    %0 = arith.cmpi eq, %arg0, %c0_i32 : i32
    %1 = arith.extui %0 : i1 to i32
    %c0_i32_0 = arith.constant 0 : i32
    %2 = arith.cmpi ne, %1, %c0_i32_0 : i32
    scf.if %2 {
      %cst_30 = arith.constant 0.000000e+00 : f32
      %56 = vector.broadcast %cst_30 : f32 to vector<2x4x16xf32>
      %c0_31 = arith.constant 0 : index
      %c0_32 = arith.constant 0 : index
      %c0_33 = arith.constant 0 : index
      %57 = vector.load %arg6[%c0_31, %c0_32, %c0_33] : memref<2x4x16xf32, #tpu.memory_space<vmem>>, vector<2x4x16xf32>
      tpu.vector_store %arg6[%c0_31, %c0_32, %c0_33], %56 {strides = array<i32>} : memref<2x4x16xf32, #tpu.memory_space<vmem>>, vector<2x4x16xf32>,
    } else {
    }
    %c0 = arith.constant 0 : index
    %c0_1 = arith.constant 0 : index
    %c0_2 = arith.constant 0 : index
    %3 = vector.load %arg6[%c0, %c0_1, %c0_2] : memref<2x4x16xf32, #tpu.memory_space<vmem>>, vector<2x4x16xf32>
    %c0_3 = arith.constant 0 : index
    %c0_4 = arith.constant 0 : index
    %c0_5 = arith.constant 0 : index
    %c0_6 = arith.constant 0 : index
    %4 = vector.load %arg1[%c0_3, %c0_4, %c0_5, %c0_6] : memref<2x1x4x16xf32, #tpu.memory_space<vmem>>, vector<2x1x4x16xf32>
    %5 = vector.shape_cast %4 : vector<2x1x4x16xf32> to vector<2x4x16xf32>
    %6 = arith.addf %3, %5 : vector<2x4x16xf32>
    %c0_7 = arith.constant 0 : index
    %c0_8 = arith.constant 0 : index
    %c0_9 = arith.constant 0 : index
    %7 = vector.load %arg2[%c0_7, %c0_8, %c0_9] : memref<1x4x4xf32, #tpu.memory_space<vmem>>, vector<1x4x4xf32>
    %8 = vector.shape_cast %7 : vector<1x4x4xf32> to vector<4x4xf32>
    %9 = arith.truncf %8 : vector<4x4xf32> to vector<4x4xbf16>
    %10 = vector.shape_cast %9 : vector<4x4xbf16> to vector<1x4x4xbf16>
    %11 = vector.broadcast %10 : vector<1x4x4xbf16> to vector<2x4x4xbf16>
    %12 = arith.truncf %6 : vector<2x4x16xf32> to vector<2x4x16xbf16>
    %cst = arith.constant dense<0.000000e+00> : vector<2x4x16xf32>
    %13 = tpu.matmul %11, %12, %cst {dimension_numbers = #tpu.dot_dimension_numbers<[2], [1], [1], [2], [0, 0, 0, 1, 1, 2], [0], [0]>} : vector<2x4x4xbf16>, vector<2x4x16xbf16>, vector<2x4x16xf32> -> vector<2x4x16xf32>
    %cst_10 = arith.constant 0.000000e+00 : f32
    %14 = vector.broadcast %cst_10 : f32 to vector<2x4x16xf32>
    %15 = arith.maximumf %13, %14 : vector<2x4x16xf32>
    %cst_11 = arith.constant dense<0.000000e+00> : vector<2x4xf32>
    %16 = vector.multi_reduction <add>, %15, %cst_11 [2] : vector<2x4x16xf32> to vector<2x4xf32>
    %17 = vector.shape_cast %16 : vector<2x4xf32> to vector<2x4x1xf32>
    %cst_12 = arith.constant dense<0.000000e+00> : vector<4x1xf32>
    %18 = vector.multi_reduction <add>, %17, %cst_12 [0] : vector<2x4x1xf32> to vector<4x1xf32>
    %19 = vector.shape_cast %18 : vector<4x1xf32> to vector<1x4x1xf32>
    %cst_13 = arith.constant 3.125000e-02 : f32
    %20 = vector.broadcast %cst_13 : f32 to vector<1x4x1xf32>
    %21 = arith.mulf %19, %20 : vector<1x4x1xf32>
    %22 = arith.mulf %15, %15 : vector<2x4x16xf32>
    %cst_14 = arith.constant dense<0.000000e+00> : vector<2x4xf32>
    %23 = vector.multi_reduction <add>, %22, %cst_14 [2] : vector<2x4x16xf32> to vector<2x4xf32>
    %24 = vector.shape_cast %23 : vector<2x4xf32> to vector<2x4x1xf32>
    %cst_15 = arith.constant dense<0.000000e+00> : vector<4x1xf32>
    %25 = vector.multi_reduction <add>, %24, %cst_15 [0] : vector<2x4x1xf32> to vector<4x1xf32>
    %26 = vector.shape_cast %25 : vector<4x1xf32> to vector<1x4x1xf32>
    %cst_16 = arith.constant 3.125000e-02 : f32
    %27 = vector.broadcast %cst_16 : f32 to vector<1x4x1xf32>
    %28 = arith.mulf %26, %27 : vector<1x4x1xf32>
    %29 = arith.mulf %21, %21 : vector<1x4x1xf32>
    %30 = arith.subf %28, %29 : vector<1x4x1xf32>
    %cst_17 = arith.constant 0.000000e+00 : f32
    %31 = vector.broadcast %cst_17 : f32 to vector<1x4x1xf32>
    %32 = arith.maximumf %30, %31 : vector<1x4x1xf32>
    %c0_18 = arith.constant 0 : index
    %c0_19 = arith.constant 0 : index
    %c0_20 = arith.constant 0 : index
    %33 = vector.load %arg3[%c0_18, %c0_19, %c0_20] : memref<1x4x1xf32, #tpu.memory_space<vmem>>, vector<1x4x1xf32>
    %34 = vector.shape_cast %33 : vector<1x4x1xf32> to vector<4x1xf32>
    %cst_21 = arith.constant 9.99999974E-6 : f32
    %35 = vector.broadcast %cst_21 : f32 to vector<1x4x1xf32>
    %36 = arith.addf %32, %35 : vector<1x4x1xf32>
    %37 = math.rsqrt %36 : vector<1x4x1xf32>
    %38 = vector.shape_cast %34 : vector<4x1xf32> to vector<1x4x1xf32>
    %39 = arith.mulf %38, %37 : vector<1x4x1xf32>
    %c0_22 = arith.constant 0 : index
    %c0_23 = arith.constant 0 : index
    %c0_24 = arith.constant 0 : index
    %40 = vector.load %arg4[%c0_22, %c0_23, %c0_24] : memref<1x4x1xf32, #tpu.memory_space<vmem>>, vector<1x4x1xf32>
    %41 = vector.shape_cast %40 : vector<1x4x1xf32> to vector<4x1xf32>
    %42 = arith.mulf %39, %21 : vector<1x4x1xf32>
    %43 = vector.shape_cast %41 : vector<4x1xf32> to vector<1x4x1xf32>
    %44 = arith.subf %43, %42 : vector<1x4x1xf32>
    %45 = vector.broadcast %39 : vector<1x4x1xf32> to vector<2x4x16xf32>
    %46 = arith.mulf %45, %15 : vector<2x4x16xf32>
    %47 = vector.broadcast %44 : vector<1x4x1xf32> to vector<2x4x16xf32>
    %48 = arith.addf %46, %47 : vector<2x4x16xf32>
    %c0_25 = arith.constant 0 : index
    %c0_26 = arith.constant 0 : index
    %c0_27 = arith.constant 0 : index
    %c0_28 = arith.constant 0 : index
    %49 = vector.load %arg5[%c0_25, %c0_26, %c0_27, %c0_28] : memref<2x1x4x16xf32, #tpu.memory_space<vmem>>, vector<2x1x4x16xf32>
    %50 = vector.shape_cast %49 : vector<2x1x4x16xf32> to vector<2x4x16xf32>
    %51 = vector.shape_cast %48 : vector<2x4x16xf32> to vector<2x1x4x16xf32>
    tpu.vector_store %arg5[%c0_25, %c0_26, %c0_27, %c0_28], %51 {strides = array<i32>} : memref<2x1x4x16xf32, #tpu.memory_space<vmem>>, vector<2x1x4x16xf32>,
    %c1_i32 = arith.constant 1 : i32
    %52 = arith.addi %arg0, %c1_i32 : i32
    %c3_i32 = arith.constant 3 : i32
    %53 = arith.cmpi slt, %52, %c3_i32 : i32
    %54 = arith.extui %53 : i1 to i32
    %c0_i32_29 = arith.constant 0 : i32
    %55 = arith.cmpi ne, %54, %c0_i32_29 : i32
    scf.if %55 {
      %c0_30 = arith.constant 0 : index
      %c0_31 = arith.constant 0 : index
      %c0_32 = arith.constant 0 : index
      %56 = vector.load %arg6[%c0_30, %c0_31, %c0_32] : memref<2x4x16xf32, #tpu.memory_space<vmem>>, vector<2x4x16xf32>
      tpu.vector_store %arg6[%c0_30, %c0_31, %c0_32], %48 {strides = array<i32>} : memref<2x4x16xf32, #tpu.memory_space<vmem>>, vector<2x4x16xf32>,
    } else {
    }
    return
  }
  func.func @transform_0(%arg0: i32) -> (i32, i32, i32, i32) {
    %c0_i32 = arith.constant 0 : i32
    %c0_i32_0 = arith.constant 0 : i32
    %c0_i32_1 = arith.constant 0 : i32
    %c0_i32_2 = arith.constant 0 : i32
    return %c0_i32, %arg0, %c0_i32_0, %c0_i32_1 : i32, i32, i32, i32
  }
  func.func @transform_1(%arg0: i32) -> (i32, i32, i32) {
    %c0_i32 = arith.constant 0 : i32
    %c0_i32_0 = arith.constant 0 : i32
    %c0_i32_1 = arith.constant 0 : i32
    return %arg0, %c0_i32, %c0_i32_0 : i32, i32, i32
  }
  func.func @transform_2(%arg0: i32) -> (i32, i32, i32) {
    %c0_i32 = arith.constant 0 : i32
    %c0_i32_0 = arith.constant 0 : i32
    %c0_i32_1 = arith.constant 0 : i32
    return %arg0, %c0_i32, %c0_i32_0 : i32, i32, i32
  }
  func.func @transform_3(%arg0: i32) -> (i32, i32, i32) {
    %c0_i32 = arith.constant 0 : i32
    %c0_i32_0 = arith.constant 0 : i32
    %c0_i32_1 = arith.constant 0 : i32
    return %arg0, %c0_i32, %c0_i32_0 : i32, i32, i32
  }
  func.func @transform_4(%arg0: i32) -> (i32, i32, i32, i32) {
    %c0_i32 = arith.constant 0 : i32
    %c0_i32_0 = arith.constant 0 : i32
    %c0_i32_1 = arith.constant 0 : i32
    %c0_i32_2 = arith.constant 0 : i32
    return %c0_i32, %arg0, %c0_i32_0, %c0_i32_1 : i32, i32, i32, i32
  }
}

</mosaic_0001>

<bundles_post_ra>
// kernel: res2conv1d_relu_bn.1
= control target key start
LH: loop header
LB: loop body
LE: loop exit
PB: predicated region body
PF: predicated region fallthrough
CT: control target
= control target key end

     0   :  { %s721_s15 = smov 0   ;;  %s723_s16 = smov 0   ;;  %s813_s0 = inlined_call_operand.vmem [shape: f32[2,4,4,16], index: 0, kind: input, shape index: {}, may-alias: {0,4}]   ;;  %s814_s1 = inlined_call_operand.vmem [shape: f32[3,4,4], index: 1, kind: input, shape index: {}]   ;;  %s815_s2 = inlined_call_operand.vmem [shape: f32[3,4,1], index: 2, kind: input, shape index: {}]   ;;  %s816_s3 = inlined_call_operand.vmem [shape: f32[3,4,1], index: 3, kind: input, shape index: {}]   ;;  %s817_s4 = inlined_call_operand.vmem [shape: f32[2,4,4,16], index: 4, kind: output, shape index: {}, may-alias: {0,4}]  }
   0x1   :  { %s725_s17 = smov 0  }
   0x2 LB: > { %s734_s18 = sadd.s32 4294967295, %s690_s17   ;;  %s736_s19 = sadd.s32 1, %s690_s17   ;;  %s690_s17 = sphi %s725_s17, %s821_s17   ;;  %s686_s16 = sphi %s723_s16, %s820_s16   ;;  %s682_s15 = sphi %s721_s15, %s819_s15  }
   0x3   : > { %s18_s20 = ssub.s32 %s690_s17, %s736_s19  ;;  %s21_s21 = sadd.s32 1, %s686_s16 }
   0x4   : > { %p19_p0 = scmp.eq.s32.totalorder %s18_s20, 0  ;;  %p28_p1 = scmp.ne.s32.totalorder %s686_s16, %s682_s15 }
   0x5   : > { %p29_p2 = scmp.eq.s32.totalorder %s690_s17, 0  ;;  %p136_p3 = scmp.eq.s32.totalorder %s734_s18, 2 }
   0x6   : > { %s744_s22 = scalar_select %p19_p0, %s686_s16, %s21_s21  }
   0x7   : > { %p30_p4 = por %p29_p2, %p28_p1  ;;  %p746_p5 = por %p136_p3, %p28_p1 }
   0x8   : > { %p603_p6 = scmp.ge.s32.totalorder %s690_s17, 3 }
   0xa   : > { %158 = sbr.rel (%p603_p6) target bundleno = 24 (0x18), region = 16 }
  0x11   : > { %161 = sbr.rel (!%p30_p4) target bundleno = 24 (0x18), region = 20  ;;  %s163_s24 = sand.u32 (%p30_p4), 1, %s686_s16  }
  0x12   : > { %s605_s25 = sshll.u32 (%p30_p4), %s690_s17, 2  ;;  %s604_s26 = sshll.u32 (%p30_p4), %s163_s24, 3 }
  0x13   : > { %s167_s29 = scalar_lea.vmem (%p30_p4), %s813_s0, %s605_s25  ;;  %s165_s30 = scalar_lea.vmem (%p30_p4), [#allocation3], %s604_s26 }
  0x14   : > { %v183_v0 = vld [vmem:[%s167_s29] sm:$0xf] (%p30_p4)  ;;  %v185_v1 = vld [vmem:[%s167_s29 + $0x10] sm:$0xf] (%p30_p4) }
  0x15   : > { %184 = vst [vmem:[%s165_s30] sm:$0xf] (%p30_p4), %v183_v0  ;;  %186 = vst [vmem:[%s165_s30 + $0x4] sm:$0xf] (%p30_p4), %v185_v1 }
  0x18 PF: > { %p606_p7 = scmp.ge.s32.totalorder %s690_s17, 1  ;;  %p233_p8 = scmp.lt.s32.totalorder %s690_s17, 4 }
  0x1a   : > { %p234_p9 = pnand %p606_p7, %p233_p8 }
  0x1b   : > { %s240_s5 = sand.u32 (!%p234_p9), 1, %s682_s15   ;;  %p276_p10 = scmp.lt.s32.totalorder (!%p234_p9), %s734_s18, 2 }
  0x1c   : > { %237 = sbr.rel (%p234_p9) target bundleno = 584 (0x248), region = 73  ;;  %s607_s6 = sshll.u32 (!%p234_p9), %s240_s5, 3 }
  0x1d   : > { %s242_s21 = scalar_lea.vmem (!%p234_p9), [#allocation3], %s607_s6  ;;  %s771_s24 = scalar_lea.vmem (!%p234_p9), [#allocation4], %s607_s6 }
  0x1e   : > { %p612_p11 = scmp.ne.s32.totalorder (!%p234_p9), %s734_s18, 0 }
  0x23   : > { %s277_s7 = scalar_select %p276_p10, %s734_s18, 2 }
  0x24   : > { %292 = sbr.rel (%p612_p11) target bundleno = 43 (0x2b), region = 81  ;;  %vm293_vm0 = vcmask (!%p612_p11), 125952   ;;  %v692_v2 = vmov (!%p612_p11), 0.0  }
  0x25   : > { %s757_s8 = sshll.u32 %s277_s7, 2  ;;  %294 = vst.msk [vmem:[#allocation2] sm:$0xf] (!%p612_p11), %vm293_vm0, %v692_v2  ;;  %295 = vst.msk [vmem:[#allocation2 + $0x4] sm:$0xf] (!%p612_p11), %vm293_vm0, %v692_v2 }
  0x26   : > { %s279_s11 = scalar_lea.vmem %s814_s1, %s757_s8  ;;  %s283_s14 = scalar_lea.vmem %s815_s2, %s757_s8 }
  0x27   : > { %s287_s15 = scalar_lea.vmem %s816_s3, %s757_s8 }
  0x2b PF: > { %v298_v4 = vld [vmem:[%s242_s21] sm:$0xf]  ;;  %v693_v5 = vmov 0.0   ;;  %v299_v8 = vld [vmem:[%s242_s21 + $0x4] sm:$0xf]  ;;  %vm310_vm1 = vcmask 1041408  }
  0x2c   : > { %v296_v3 = vld [vmem:[#allocation2] sm:$0xf]  ;;  %624 = vmatprep.subr.bf16.mxu0 %v693_v5  ;;  %630 = vmatprep.subr.bf16.mxu1 %v693_v5  ;;  %v297_v7 = vld [vmem:[#allocation2 + $0x4] sm:$0xf]  ;;  %vm694_vm2 = vmmov 0   ;;  %vm306_vm3 = vcmask 31744  }
  0x2d   : > { %v300_v6 = vadd.f32 %v298_v4, %v296_v3  ;;  %v301_v9 = vadd.f32 %v299_v8, %v297_v7  ;;  %626 = vmatprep.mubr.msk.bf16.mxu0 %vm694_vm2, %v693_v5  ;;  %v302_v10 = vld [vmem:[%s279_s11] sm:$0xf]  ;;  %632 = vmatprep.mubr.msk.bf16.mxu1 %vm694_vm2, %v693_v5  ;;  %vm399_vm4 = vcmask 125952   ;;  %v695_v32 = vmov 0   ;;  %s449_s29 = sadd.s32 1, %s734_s18 }
  0x2e   : > { %v303_v14 = vpack.c.bf16 %v302_v10, %v302_v10  ;;  %664 = vset.pattern.permute.xlu0 %v695_v32  ;;  %665 = vset.pattern.permute.xlu1 %v695_v32  ;;  %vm406_vm5 = vcmask 1043456   ;;  %v426_v49 = vld [vmem:[%s283_s14] sm:$0xf]  ;;  %p615_p12 = scmp.ge.s32.totalorder %s449_s29, 3 }
  0x2f   : > { %v304_v11 = vpack.c.bf16 %v300_v6, %v300_v6  ;;  %v305_v12 = vpack.c.bf16 %v301_v9, %v301_v9  ;;  %v430_v52 = vld [vmem:[%s287_s15] sm:$0xf] }
  0x31   : > { %v312_v13 = vsel %vm310_vm1, %v304_v11, 0  ;;  %v355_v15 = vsel %vm310_vm1, %v305_v12, 0 }
  0x32   : > { %625 = vmatpush3.bf16.msra.mxu0 %v312_v13  ;;  %631 = vmatpush3.bf16.msra.mxu1 %v355_v15 }
  0x35   : > { %627 = vmatmul.mubr.msk.bf16.vlgmr.msra.gmra.mrb[0].mxu0 %vm306_vm3, %v303_v14  ;;  %633 = vmatmul.mubr.msk.bf16.vlgmr.msra.gmra.mrb[0].mxu1 %vm306_vm3, %v303_v14 }
 0x108   : > { %v348_v16 = vpop.f32.mrb[0].mxu0  ;;  %v391_v19 = vpop.f32.mrb[0].mxu1 }
 0x109   : > { %v397_v17 = vmax.f32 %v348_v16, 0.0  ;;  %v628_v18 = vpop.f32.mrb[1].mxu0  ;;  %v398_v20 = vmax.f32 %v391_v19, 0.0  ;;  %v634_v22 = vpop.f32.mrb[1].mxu1 }
 0x10a   : > { %v351_v21 = vpop.f32.mrb[2].mxu0  ;;  %v394_v24 = vpop.f32.mrb[2].mxu1 }
 0x10b   : > { %v629_v23 = vpop.f32.mrb[3].mxu0  ;;  %v400_v25 = vsel %vm399_vm4, %v397_v17, 0.0  ;;  %v411_v26 = vmul.f32 %v397_v17, %v397_v17  ;;  %v635_v27 = vpop.f32.mrb[3].mxu1  ;;  %v412_v28 = vmul.f32 %v398_v20, %v398_v20  ;;  %v403_v30 = vsel %vm399_vm4, %v398_v20, 0.0 }
 0x10c   : > { %401 = vadd.xlane.f32.xlu0 %v400_v25 }
 0x10d   : > { %v413_v29 = vsel %vm399_vm4, %v411_v26, 0.0  ;;  %v416_v31 = vsel %vm399_vm4, %v412_v28, 0.0 }
 0x10e   : > { %414 = vadd.xlane.f32.xlu1 %v413_v29 }
 0x110   : > { %404 = vadd.xlane.f32.xlu0 %v403_v30 }
 0x112   : > { %417 = vadd.xlane.f32.xlu1 %v416_v31 }
 0x199   : > { %v402_v33 = vpop.xlane.xlu0 %401 }
 0x19a   : > { %v407_v36 = vsel %vm406_vm5, %v402_v33, 0.0 }
 0x19b   : > { %v415_v34 = vpop.xlane.xlu1 %414 }
 0x19c   : > { %v419_v40 = vsel %vm406_vm5, %v415_v34, 0.0 }
 0x19d   : > { %v405_v35 = vpop.xlane.xlu0 %404 }
 0x19e   : > { %v408_v37 = vsel %vm406_vm5, %v405_v35, 0.0 }
 0x19f   : > { %v409_v38 = vadd.f32 %v408_v37, %v407_v36  ;;  %v418_v39 = vpop.xlane.xlu1 %417 }
 0x1a0   : > { %v420_v41 = vsel %vm406_vm5, %v418_v39, 0.0 }
 0x1a1   : > { %v410_v42 = vmul.f32 0.03125, %v409_v38  ;;  %v421_v43 = vadd.f32 %v420_v41, %v419_v40 }
 0x1a3   : > { %v423_v44 = vmul.f32 %v410_v42, %v410_v42  ;;  %v422_v45 = vmul.f32 0.03125, %v421_v43 }
 0x1a5   : > { %v424_v46 = vsub.f32 %v422_v45, %v423_v44 }
 0x1a7   : > { %v425_v47 = vmax.f32 %v424_v46, 0.0 }
 0x1a9   : > { %v427_v48 = vadd.f32 1e-05, %v425_v47 }
 0x1ab   : > { %666 = vrsqrt.f32 %v427_v48 }
 0x1b5   : > { %v667_v50 = vpop.eup %666 }
 0x1b6   : > { %v429_v51 = vmul.f32 %v667_v50, %v426_v49 }
 0x1b8   : > { %435 = vperm.xlu0 %664, %v429_v51   ;;  %v431_v53 = vmul.f32 %v429_v51, %v410_v42 }
 0x1ba   : > { %v432_v54 = vsub.f32 %v430_v52, %v431_v53 }
 0x1bc   : > { %442 = vperm.xlu1 %665, %v432_v54  }
 0x237   : > { %v436_v55 = vpop.permute.xlu0 %435 }
 0x238   : > { %v438_v56 = vmul.f32 %v436_v55, %v397_v17  ;;  %v439_v57 = vmul.f32 %v436_v55, %v398_v20  ;;  %453 = sbr.rel (%p615_p12) target bundleno = 576 (0x240), region = 85 }
 0x23b   : > { %v443_v58 = vpop.permute.xlu1 %442 }
 0x23c   : > { %v445_v59 = vadd.f32 %v443_v58, %v438_v56  ;;  %v446_v60 = vadd.f32 %v443_v58, %v439_v57 }
 0x23e   : > { %447 = vst.msk [vmem:[%s771_s24] sm:$0xf] %vm399_vm4, %v445_v59  ;;  %448 = vst.msk [vmem:[%s771_s24 + $0x4] sm:$0xf] %vm399_vm4, %v446_v60 }
 0x23f   : > { %454 = vst.msk [vmem:[#allocation2] sm:$0xf] %vm399_vm4, %v445_v59  ;;  %455 = vst.msk [vmem:[#allocation2 + $0x4] sm:$0xf] %vm399_vm4, %v446_v60 }
 0x240 PF: > { %462 = sbr.rel (!%p746_p5) target bundleno = 584 (0x248), region = 89  ;;  %s617_s30 = sshll.u32 (%p746_p5), %s734_s18, 2 }
 0x241   : > { %s464_s7 = scalar_lea.vmem (%p746_p5), %s817_s4, %s617_s30 }
 0x246   : > { %v480_v61 = vld [vmem:[%s771_s24] sm:$0xf] (%p746_p5)  ;;  %v482_v62 = vld [vmem:[%s771_s24 + $0x4] sm:$0xf] (%p746_p5) }
 0x247   : > { %481 = vst [vmem:[%s464_s7] sm:$0xf] %v480_v61  ;;  %483 = vst [vmem:[%s464_s7 + $0x10] sm:$0xf] %v482_v62 }
 0x248 PF: > { %p11_p13 = scmp.ge.s32.totalorder %s736_s19, 5   ;;  %s819_s15 = smov %s686_s16 }
 0x249   : > { %s820_s16 = smov %s744_s22  ;;  %s821_s17 = smov %s736_s19 }
 0x24a   :  { %13 = sbr.rel (!%p11_p13) target bundleno = 2 (0x2), region = 170 }

</bundles_post_ra>
